<compile_context>
chip_gen: v5e
topology: v5e:2x2
jax: 0.10.0
libtpu: 0.0.40
codegen_flags: <defaults>
</compile_context>

<pallas_src>
import functools

import jax
import jax.numpy as jnp
from jax.experimental import pallas as pl
from jax.experimental.pallas import tpu as pltpu


def _round_up(x, m):
    return ((x + m - 1) // m) * m


# ----------------------------------------------------------------------------
# Kernel
# ----------------------------------------------------------------------------
def _modulator_kernel(num_layers, dim_hidden, z_ref, wz_ref, b_ref, *rest):
    """z_ref: (Bt, dim_in); wz_ref: (dim_in, LH_pad); b_ref: (1, LH_pad);
    [wh_ref: (L-1, H, H) only if L > 1]; out_ref: (Bt, LH_pad)."""
    if num_layers > 1:
        wh_ref, out_ref = rest
    else:
        (out_ref,) = rest

    z = z_ref[...]  # (Bt, dim_in) f32

    # One wide, layer-independent matmul: every layer's z-contribution + bias.
    # Padded columns (>= L*H) of wz / b are zero, so zc is zero there.
    zc = jnp.dot(z, wz_ref[...], preferred_element_type=jnp.float32) + b_ref[...]

    # Single lane-dense full-width store: correct for the layer-0 columns
    # (h0 = relu(z @ W0 + b0)) and zeroes the padded tail; layer>=1 columns
    # are overwritten by the slice stores below.
    out_ref[...] = jnp.maximum(zc, 0.0)

    h = jnp.maximum(zc[:, :dim_hidden], 0.0)  # h0
    for i in range(1, num_layers):
        # cat(h, z) @ W_i + b_i == h @ W_i[:H] + (z @ W_i[H:] + b_i)
        y = jnp.dot(h, wh_ref[i - 1], preferred_element_type=jnp.float32)
        h = jnp.maximum(y + zc[:, i * dim_hidden:(i + 1) * dim_hidden], 0.0)
        out_ref[:, i * dim_hidden:(i + 1) * dim_hidden] = h


# ----------------------------------------------------------------------------
# One-time parameter packing (call at module-build time, NOT per forward)
# ----------------------------------------------------------------------------
def pack_modulator_params(weights, biases, *, dim_in, dim_hidden):
    """weights[i]: transposed Linear weight of shape (in_dim_i, dim_hidden),
       in_dim_0 = dim_in, in_dim_i = dim_hidden + dim_in for i > 0.
       biases[i]: (dim_hidden,).
       Returns (wz, b_packed, wh) with the lane dim padded to a multiple of 128."""
    num_layers = len(weights)
    lh = num_layers * dim_hidden
    lh_pad = _round_up(lh, 128)

    # z-side weights: W0 plus the z-rows W_i[H:, :] of every later layer.
    wz_parts = [jnp.asarray(weights[0], jnp.float32)]
    for w in weights[1:]:
        wz_parts.append(jnp.asarray(w, jnp.float32)[dim_hidden:, :])
    wz = jnp.concatenate(wz_parts, axis=1)  # (dim_in, L*H)

    b_packed = jnp.concatenate(
        [jnp.asarray(b, jnp.float32).reshape(dim_hidden) for b in biases]
    ).reshape(1, lh)  # (1, L*H)

    if lh_pad != lh:  # zero-pad the lane axis so the kernel output is lane-dense
        wz = jnp.pad(wz, ((0, 0), (0, lh_pad - lh)))
        b_packed = jnp.pad(b_packed, ((0, 0), (0, lh_pad - lh)))

    # h-side weights of layers 1..L-1 (none when L == 1).
    wh = None
    if num_layers > 1:
        wh = jnp.stack(
            [jnp.asarray(w, jnp.float32)[:dim_hidden, :] for w in weights[1:]], axis=0
        )  # (L-1, H, H)
    return wz, b_packed, wh


# ----------------------------------------------------------------------------
# Forward wrapper
# ----------------------------------------------------------------------------
def modulator_forward(z, packed, *, dim_in, dim_hidden, num_layers, block_b=256):
    """z: (B, dim_in) or (dim_in,) f32; packed: output of pack_modulator_params.
       Returns (B, num_layers, dim_hidden) (or (num_layers, dim_hidden) for 1-D z)."""
    wz, b_packed, wh = packed
    lh = num_layers * dim_hidden
    lh_pad = wz.shape[1]

    squeeze = z.ndim == 1
    z2 = z.reshape(-1, dim_in).astype(jnp.float32)
    batch = z2.shape[0]

    # M tile: multiple of 8 (sublane), up to block_b (256 fills the v6e/v7x MXU;
    # use block_b=128 to match the v5e MXU exactly).
    bt = min(block_b, _round_up(batch, 8))
    b_pad = _round_up(batch, bt)
    if b_pad != batch:
        z2 = jnp.pad(z2, ((0, b_pad - batch), (0, 0)))
    grid = (b_pad // bt,)

    kernel = functools.partial(_modulator_kernel, num_layers, dim_hidden)

    in_specs = [
        pl.BlockSpec((bt, dim_in), lambda i: (i, 0)),        # z: tiled over batch
        pl.BlockSpec((dim_in, lh_pad), lambda i: (0, 0)),    # wz: resident
        pl.BlockSpec((1, lh_pad), lambda i: (0, 0)),         # biases: resident
    ]
    args = [z2, wz, b_packed]
    if num_layers > 1:
        in_specs.append(pl.BlockSpec(wh.shape, lambda i: (0, 0, 0)))  # wh: resident
        args.append(wh)

    out = pl.pallas_call(
        kernel,
        out_shape=jax.ShapeDtypeStruct((b_pad, lh_pad), jnp.float32),
        grid=grid,
        in_specs=in_specs,
        out_specs=pl.BlockSpec((bt, lh_pad), lambda i: (i, 0)),
        compiler_params=pltpu.CompilerParams(
            dimension_semantics=("parallel",),  # shard batch tiles across TCs (v7x)
        ),
    )(*args)

    out = out[:batch, :lh].reshape(batch, num_layers, dim_hidden)
    if squeeze:
        out = out[0]
    return out


# ----------------------------------------------------------------------------
# Pure-JAX reference (mirrors the PyTorch forward exactly, with real concat)
# ----------------------------------------------------------------------------
def modulator_reference_single(z, weights, biases):
    x = z
    hiddens = []
    for w, b in zip(weights, biases):
        h = jax.nn.relu(
            jnp.dot(x, w, precision=jax.lax.Precision.HIGHEST) + b
        )
        hiddens.append(h)
        x = jnp.concatenate((h, z), axis=0)
    return tuple(hiddens)


if __name__ == "__main__":
    dim_in, dim_hidden, num_layers = 32, 32, 3
    batch = 512  # batched latents; 256-row M tiles -> grid of 2 "parallel" steps

    key = jax.random.PRNGKey(0)
    key, zk = jax.random.split(key)
    zb = jax.random.normal(zk, (batch, dim_in), dtype=jnp.float32)

    # Deterministic params (PyTorch nn.Linear default init range), stored transposed.
    weights, biases = [], []
    for ind in range(num_layers):
        in_dim = dim_in if ind == 0 else dim_hidden + dim_in
        bound = 1.0 / (in_dim ** 0.5)
        key, wk, bk = jax.random.split(key, 3)
        w = jax.random.uniform(wk, (in_dim, dim_hidden), jnp.float32, -bound, bound)
        b = jax.random.uniform(bk, (dim_hidden,), jnp.float32, -bound, bound)
        weights.append(w)
        biases.append(b)

    # Pack parameters ONCE (hoisted out of the per-call path).
    packed = pack_modulator_params(weights, biases, dim_in=dim_in, dim_hidden=dim_hidden)

    fwd = jax.jit(
        functools.partial(
            modulator_forward, dim_in=dim_in, dim_hidden=dim_hidden, num_layers=num_layers
        )
    )
    out = jax.block_until_ready(fwd(zb, packed))  # (batch, num_layers, dim_hidden)
    assert out.shape == (batch, num_layers, dim_hidden) and out.dtype == jnp.float32

    # Batched correctness check vs. module-exact reference.
    ref_b = jax.vmap(
        lambda zz: jnp.stack(modulator_reference_single(zz, weights, biases))
    )(zb)
    assert jnp.allclose(out, ref_b, rtol=5e-3, atol=1e-3)

    # Single-latent (module-exact) semantics: 1-D z in -> tuple of hiddens out.
    z1 = zb[0]
    out1 = modulator_forward(
        z1, packed, dim_in=dim_in, dim_hidden=dim_hidden, num_layers=num_layers
    )
    hiddens = tuple(out1[i] for i in range(num_layers))  # matches the PyTorch tuple return
    ref1 = modulator_reference_single(z1, weights, biases)
    for h, r in zip(hiddens, ref1):
        assert h.shape == (dim_hidden,) and jnp.allclose(h, r, rtol=5e-3, atol=1e-3)

    print("KERNEL_OK")
</pallas_src>

<mosaic_0001>
module attributes {stable_mosaic.version = 11 : i64} {
  func.func @_modulator_kernel(%arg0: i32, %arg1: memref<256x32xf32, #tpu.memory_space<vmem>>, %arg2: memref<32x128xf32, #tpu.memory_space<vmem>>, %arg3: memref<1x128xf32, #tpu.memory_space<vmem>>, %arg4: memref<2x32x32xf32, #tpu.memory_space<vmem>>, %arg5: memref<256x128xf32, #tpu.memory_space<vmem>>) attributes {dimension_semantics = [#tpu.dimension_semantics<parallel>], iteration_bounds = array<i64: 2>, scalar_prefetch = 0 : i64, scratch_operands = 0 : i64, tpu.core_type = #tpu.core_type<tc>, window_params = [{transform_indices = @transform_0, window_bounds = array<i64: 256, 32>}, {pipeline_mode = #tpu.pipeline_mode<synchronous>, transform_indices = @transform_1, window_bounds = array<i64: 32, 128>}, {pipeline_mode = #tpu.pipeline_mode<synchronous>, transform_indices = @transform_2, window_bounds = array<i64: 1, 128>}, {pipeline_mode = #tpu.pipeline_mode<synchronous>, transform_indices = @transform_3, window_bounds = array<i64: 2, 32, 32>}, {transform_indices = @transform_4, window_bounds = array<i64: 256, 128>}]} {
    %c0 = arith.constant 0 : index
    %c0_0 = arith.constant 0 : index
    %0 = vector.load %arg1[%c0, %c0_0] : memref<256x32xf32, #tpu.memory_space<vmem>>, vector<256x32xf32>
    %c0_1 = arith.constant 0 : index
    %c0_2 = arith.constant 0 : index
    %1 = vector.load %arg2[%c0_1, %c0_2] : memref<32x128xf32, #tpu.memory_space<vmem>>, vector<32x128xf32>
    %cst = arith.constant dense<0.000000e+00> : vector<256x128xf32>
    %2 = tpu.matmul %0, %1, %cst {dimension_numbers = #tpu.dot_dimension_numbers<[1], [0], [0], [1], [0, 0, 1, 1], [], []>} : vector<256x32xf32>, vector<32x128xf32>, vector<256x128xf32> -> vector<256x128xf32>
    %c0_3 = arith.constant 0 : index
    %c0_4 = arith.constant 0 : index
    %3 = vector.load %arg3[%c0_3, %c0_4] : memref<1x128xf32, #tpu.memory_space<vmem>>, vector<1x128xf32>
    %4 = vector.broadcast %3 : vector<1x128xf32> to vector<256x128xf32>
    %5 = arith.addf %2, %4 : vector<256x128xf32>
    %cst_5 = arith.constant 0.000000e+00 : f32
    %6 = vector.broadcast %cst_5 : f32 to vector<256x128xf32>
    %7 = arith.maximumf %5, %6 : vector<256x128xf32>
    %c0_6 = arith.constant 0 : index
    %c0_7 = arith.constant 0 : index
    %8 = vector.load %arg5[%c0_6, %c0_7] : memref<256x128xf32, #tpu.memory_space<vmem>>, vector<256x128xf32>
    tpu.vector_store %arg5[%c0_6, %c0_7], %7 {strides = array<i32>} : memref<256x128xf32, #tpu.memory_space<vmem>>, vector<256x128xf32>,
    %9 = vector.extract_strided_slice %5 {offsets = [0, 0], sizes = [256, 32], strides = [1, 1]} : vector<256x128xf32> to vector<256x32xf32>
    %cst_8 = arith.constant 0.000000e+00 : f32
    %10 = vector.broadcast %cst_8 : f32 to vector<256x32xf32>
    %11 = arith.maximumf %9, %10 : vector<256x32xf32>
    %c0_9 = arith.constant 0 : index
    %c0_10 = arith.constant 0 : index
    %c0_11 = arith.constant 0 : index
    %12 = vector.load %arg4[%c0_9, %c0_10, %c0_11] : memref<2x32x32xf32, #tpu.memory_space<vmem>>, vector<1x32x32xf32>
    %13 = vector.shape_cast %12 : vector<1x32x32xf32> to vector<32x32xf32>
    %cst_12 = arith.constant dense<0.000000e+00> : vector<256x32xf32>
    %14 = tpu.matmul %11, %13, %cst_12 {dimension_numbers = #tpu.dot_dimension_numbers<[1], [0], [0], [1], [0, 0, 1, 1], [], []>} : vector<256x32xf32>, vector<32x32xf32>, vector<256x32xf32> -> vector<256x32xf32>
    %15 = vector.extract_strided_slice %5 {offsets = [0, 32], sizes = [256, 32], strides = [1, 1]} : vector<256x128xf32> to vector<256x32xf32>
    %16 = arith.addf %14, %15 : vector<256x32xf32>
    %cst_13 = arith.constant 0.000000e+00 : f32
    %17 = vector.broadcast %cst_13 : f32 to vector<256x32xf32>
    %18 = arith.maximumf %16, %17 : vector<256x32xf32>
    %c0_14 = arith.constant 0 : index
    %c32 = arith.constant 32 : index
    %19 = vector.load %arg5[%c0_14, %c32] : memref<256x128xf32, #tpu.memory_space<vmem>>, vector<256x32xf32>
    tpu.vector_store %arg5[%c0_14, %c32], %18 {strides = array<i32>} : memref<256x128xf32, #tpu.memory_space<vmem>>, vector<256x32xf32>,
    %c1 = arith.constant 1 : index
    %c0_15 = arith.constant 0 : index
    %c0_16 = arith.constant 0 : index
    %20 = vector.load %arg4[%c1, %c0_15, %c0_16] : memref<2x32x32xf32, #tpu.memory_space<vmem>>, vector<1x32x32xf32>
    %21 = vector.shape_cast %20 : vector<1x32x32xf32> to vector<32x32xf32>
    %cst_17 = arith.constant dense<0.000000e+00> : vector<256x32xf32>
    %22 = tpu.matmul %18, %21, %cst_17 {dimension_numbers = #tpu.dot_dimension_numbers<[1], [0], [0], [1], [0, 0, 1, 1], [], []>} : vector<256x32xf32>, vector<32x32xf32>, vector<256x32xf32> -> vector<256x32xf32>
    %23 = vector.extract_strided_slice %5 {offsets = [0, 64], sizes = [256, 32], strides = [1, 1]} : vector<256x128xf32> to vector<256x32xf32>
    %24 = arith.addf %22, %23 : vector<256x32xf32>
    %cst_18 = arith.constant 0.000000e+00 : f32
    %25 = vector.broadcast %cst_18 : f32 to vector<256x32xf32>
    %26 = arith.maximumf %24, %25 : vector<256x32xf32>
    %c0_19 = arith.constant 0 : index
    %c64 = arith.constant 64 : index
    %27 = vector.load %arg5[%c0_19, %c64] : memref<256x128xf32, #tpu.memory_space<vmem>>, vector<256x32xf32>
    tpu.vector_store %arg5[%c0_19, %c64], %26 {strides = array<i32>} : memref<256x128xf32, #tpu.memory_space<vmem>>, vector<256x32xf32>,
    return
  }
  func.func @transform_0(%arg0: i32) -> (i32, i32) {
    %c0_i32 = arith.constant 0 : i32
    %c0_i32_0 = arith.constant 0 : i32
    return %arg0, %c0_i32 : i32, i32
  }
  func.func @transform_1(%arg0: i32) -> (i32, i32) {
    %c0_i32 = arith.constant 0 : i32
    %c0_i32_0 = arith.constant 0 : i32
    %c0_i32_1 = arith.constant 0 : i32
    return %c0_i32, %c0_i32_0 : i32, i32
  }
  func.func @transform_2(%arg0: i32) -> (i32, i32) {
    %c0_i32 = arith.constant 0 : i32
    %c0_i32_0 = arith.constant 0 : i32
    %c0_i32_1 = arith.constant 0 : i32
    return %c0_i32, %c0_i32_0 : i32, i32
  }
  func.func @transform_3(%arg0: i32) -> (i32, i32, i32) {
    %c0_i32 = arith.constant 0 : i32
    %c0_i32_0 = arith.constant 0 : i32
    %c0_i32_1 = arith.constant 0 : i32
    %c0_i32_2 = arith.constant 0 : i32
    return %c0_i32, %c0_i32_0, %c0_i32_1 : i32, i32, i32
  }
  func.func @transform_4(%arg0: i32) -> (i32, i32) {
    %c0_i32 = arith.constant 0 : i32
    %c0_i32_0 = arith.constant 0 : i32
    return %arg0, %c0_i32 : i32, i32
  }
}

</mosaic_0001>

<bundles_post_ra>
// kernel: modulator_forward.1
= control target key start
LH: loop header
LB: loop body
LE: loop exit
PB: predicated region body
PF: predicated region fallthrough
CT: control target
= control target key end

     0   :  { %s1747_s15 = smov 0   ;;  %s2615_s0 = inlined_call_operand.vmem [shape: f32[512,32], index: 0, kind: input, shape index: {}]   ;;  %s2616_s1 = inlined_call_operand.vmem [shape: f32[32,128], index: 1, kind: input, shape index: {}]   ;;  %s2617_s2 = inlined_call_operand.vmem [shape: f32[1,128], index: 2, kind: input, shape index: {}]   ;;  %s2618_s3 = inlined_call_operand.vmem [shape: f32[2,32,32], index: 3, kind: input, shape index: {}]   ;;  %s2619_s4 = inlined_call_operand.vmem [shape: f32[512,128], index: 4, kind: output, shape index: {}]  }
   0x1 LB: > { %s1576_s16 = sadd.s32 4294967295, %s1717_s15   ;;  %p1580_p0 = scmp.ge.s32.totalorder %s1717_s15, 1  ;;  %s1717_s15 = sphi %s1747_s15, %s14_s15  }
   0x2   : > { %p163_p1 = scmp.lt.s32.totalorder %s1717_s15, 3 }
   0x4   : > { %p164_p2 = pnand %p1580_p0, %p163_p1 }
   0x5   : > { %s1581_s21 = sshll.u32 (!%p164_p2), %s1576_s16, 5  ;;  %s1719_s18 = smov (!%p164_p2), 96  }
   0x6   : > { %167 = sbr.rel (%p164_p2) target bundleno = 716 (0x2cc), region = 36  ;;  %p190_p3 = scmp.lt.s32.totalorder (!%p164_p2), %s1581_s21, 63 }
   0x7   : > { %s1720_s19 = smov (!%p164_p2), 64   ;;  %s1721_s28 = smov (!%p164_p2), 32  }
   0xb   : > { %v236_v0 = vld [vmem:[%s2616_s1 + $0x18] sm:$0xff]  ;;  %v235_v1 = vld [vmem:[%s2616_s1 + $0x10] sm:$0xff]  ;;  %v234_v2 = vld [vmem:[%s2616_s1 + $0x8] sm:$0xff]  ;;  %s2621_s21 = smov (!%p190_p3, %s1581_s21), 63  ;;  %vm241_vm0 = vcmask 261120   ;;  %vm1016_vm1 = vcmask 523520  }
   0xc   : > { %350 = vmatpush.msra.mxu0 %v236_v0  ;;  %1687 = vmatpush.msra.mxu3 %v236_v0  ;;  %v233_v3 = vld [vmem:[%s2616_s1] sm:$0xff]  ;;  %s1582_s26 = sshll.u32 %s2621_s21, 3  ;;  %v518_v18 = vld [vmem:[%s2618_s3 + $0x18] sm:$0xff]  ;;  %v517_v22 = vld [vmem:[%s2618_s3 + $0x10] sm:$0xff]  ;;  %vm1487_vm2 = vcmask 785920  }
   0xd   : > { %s1775_s29 = scalar_lea.vmem %s2615_s0, %s1582_s26  ;;  %755 = vmatpush.msra.mxu1 %v518_v18  ;;  %v516_v25 = vld [vmem:[%s2618_s3 + $0x8] sm:$0xff]  ;;  %v515_v28 = vld [vmem:[%s2618_s3] sm:$0xff]  ;;  %s1851_s17 = scalar_lea.vmem %s2619_s4, %s1582_s26 }
   0xe   : > { %351 = vmatpush.msra.mxu0 %v235_v1  ;;  %1688 = vmatpush.msra.mxu3 %v235_v1  ;;  %v201_v4 = vld [vmem:[%s1775_s29] sm:$0xff]  ;;  %v202_v6 = vld [vmem:[%s1775_s29 + $0x8] sm:$0xff]  ;;  %v203_v8 = vld [vmem:[%s1775_s29 + $0x10] sm:$0xff] }
   0xf   : > { %v225_v5 = vld [vmem:[%s1775_s29 + $0xc0] sm:$0xff]  ;;  %v226_v7 = vld [vmem:[%s1775_s29 + $0xc8] sm:$0xff]  ;;  %v227_v9 = vld [vmem:[%s1775_s29 + $0xd0] sm:$0xff]  ;;  %756 = vmatpush.msra.mxu1 %v517_v22 }
  0x10   : > { %352 = vmatpush.msra.mxu0 %v234_v2  ;;  %1689 = vmatpush.msra.mxu3 %v234_v2  ;;  %v204_v10 = vld [vmem:[%s1775_s29 + $0x18] sm:$0xff]  ;;  %v205_v12 = vld [vmem:[%s1775_s29 + $0x20] sm:$0xff]  ;;  %v206_v14 = vld [vmem:[%s1775_s29 + $0x28] sm:$0xff] }
  0x11   : > { %v228_v11 = vld [vmem:[%s1775_s29 + $0xd8] sm:$0xff]  ;;  %v229_v13 = vld [vmem:[%s1775_s29 + $0xe0] sm:$0xff]  ;;  %v230_v15 = vld [vmem:[%s1775_s29 + $0xe8] sm:$0xff]  ;;  %757 = vmatpush.msra.mxu1 %v516_v25 }
  0x12   : > { %353 = vmatpush.msra.mxu0 %v233_v3  ;;  %1690 = vmatpush.msra.mxu3 %v233_v3  ;;  %v207_v16 = vld [vmem:[%s1775_s29 + $0x30] sm:$0xff]  ;;  %v208_v19 = vld [vmem:[%s1775_s29 + $0x38] sm:$0xff]  ;;  %v209_v21 = vld [vmem:[%s1775_s29 + $0x40] sm:$0xff] }
  0x13   : > { %1585 = vmatmul.msk.f32.vlgmr.msra.gmra.mxu0 %vm241_vm0, %v201_v4  ;;  %1609 = vmatmul.msk.f32.vlgmr.msra.gmra.mxu3 %vm241_vm0, %v225_v5  ;;  %v231_v17 = vld [vmem:[%s1775_s29 + $0xf0] sm:$0xff]  ;;  %v232_v20 = vld [vmem:[%s1775_s29 + $0xf8] sm:$0xff]  ;;  %v210_v23 = vld [vmem:[%s1775_s29 + $0x48] sm:$0xff] }
  0x14   : > { %1691 = vmatpush.msrb.mxu3 %v518_v18  ;;  %v211_v24 = vld [vmem:[%s1775_s29 + $0x50] sm:$0xff]  ;;  %v212_v26 = vld [vmem:[%s1775_s29 + $0x58] sm:$0xff]  ;;  %v213_v27 = vld [vmem:[%s1775_s29 + $0x60] sm:$0xff]  ;;  %758 = vmatpush.msra.mxu1 %v515_v28 }
  0x15   : > { %v214_v29 = vld [vmem:[%s1775_s29 + $0x68] sm:$0xff]  ;;  %v215_v30 = vld [vmem:[%s1775_s29 + $0x70] sm:$0xff]  ;;  %v216_v31 = vld [vmem:[%s1775_s29 + $0x78] sm:$0xff] }
  0x16   : > { %1692 = vmatpush.msrb.mxu3 %v517_v22  ;;  %v1840_v32 = vld [vmem:[%s2617_s2] ss:$0 sm:$0xff]  ;;  %v218_v40 = vld [vmem:[%s1775_s29 + $0x88] sm:$0xff]  ;;  %v219_v47 = vld [vmem:[%s1775_s29 + $0x90] sm:$0xff] }
  0x17   : > { %v217_v34 = vld [vmem:[%s1775_s29 + $0x80] sm:$0xff]  ;;  %v220_v54 = vld [vmem:[%s1775_s29 + $0x98] sm:$0xff]  ;;  %v222_v4 = vld [vmem:[%s1775_s29 + $0xa8] sm:$0xff] }
  0x18   : > { %1693 = vmatpush.msrb.mxu3 %v516_v25  ;;  %v221_v61 = vld [vmem:[%s1775_s29 + $0xa0] sm:$0xff]  ;;  %v224_v18 = vld [vmem:[%s1775_s29 + $0xb8] sm:$0xff] }
  0x1a   : > { %1694 = vmatpush.msrb.mxu3 %v515_v28 }
  0x1b   : > { %1586 = vmatmul.msk.f32.gmra.mxu0 %vm241_vm0, %v202_v6  ;;  %1610 = vmatmul.msk.f32.gmra.mxu3 %vm241_vm0, %v226_v7 }
  0x23   : > { %1587 = vmatmul.msk.f32.gmra.mxu0 %vm241_vm0, %v203_v8  ;;  %1611 = vmatmul.msk.f32.gmra.mxu3 %vm241_vm0, %v227_v9 }
  0x2b   : > { %1588 = vmatmul.msk.f32.gmra.mxu0 %vm241_vm0, %v204_v10  ;;  %1612 = vmatmul.msk.f32.gmra.mxu3 %vm241_vm0, %v228_v11  ;;  %v223_v11 = vld [vmem:[%s1775_s29 + $0xb0] sm:$0xff] }
  0x33   : > { %1589 = vmatmul.msk.f32.gmra.mxu0 %vm241_vm0, %v205_v12  ;;  %1613 = vmatmul.msk.f32.gmra.mxu3 %vm241_vm0, %v229_v13 }
  0x3b   : > { %1590 = vmatmul.msk.f32.gmra.mxu0 %vm241_vm0, %v206_v14  ;;  %1614 = vmatmul.msk.f32.gmra.mxu3 %vm241_vm0, %v230_v15 }
  0x43   : > { %1591 = vmatmul.msk.f32.gmra.mxu0 %vm241_vm0, %v207_v16  ;;  %1615 = vmatmul.msk.f32.gmra.mxu3 %vm241_vm0, %v231_v17 }
  0x4b   : > { %1592 = vmatmul.msk.f32.gmra.mxu0 %vm241_vm0, %v208_v19  ;;  %1616 = vmatmul.msk.f32.gmra.mxu3 %vm241_vm0, %v232_v20 }
  0x53   : > { %1593 = vmatmul.msk.f32.gmra.mxu0 %vm241_vm0, %v209_v21 }
  0x5b   : > { %1594 = vmatmul.msk.f32.gmra.mxu0 %vm241_vm0, %v210_v23 }
  0x63   : > { %1595 = vmatmul.msk.f32.gmra.mxu0 %vm241_vm0, %v211_v24 }
  0x6b   : > { %1596 = vmatmul.msk.f32.gmra.mxu0 %vm241_vm0, %v212_v26 }
  0x73   : > { %1597 = vmatmul.msk.f32.gmra.mxu0 %vm241_vm0, %v213_v27 }
  0x7b   : > { %1598 = vmatmul.msk.f32.gmra.mxu0 %vm241_vm0, %v214_v29 }
  0x83   : > { %1599 = vmatmul.msk.f32.gmra.mxu0 %vm241_vm0, %v215_v30 }
  0x8b   : > { %1600 = vmatmul.msk.f32.gmra.mxu0 %vm241_vm0, %v216_v31 }
  0x90   : > { %v355_v33 = vpop.f32.mrf.mxu0 }
  0x91   : > { %v1844_v35 = vadd.f32 %v1840_v32, %v355_v33 }
  0x93   : > { %1601 = vmatmul.msk.f32.gmra.mxu0 %vm241_vm0, %v217_v34  ;;  %551 = vrot.lane.b32.xlu0 %v1844_v35, %s1719_s18  ;;  %v451_v36 = vmax.f32 %v1844_v35, 0.0 }
  0x95   : > { %483 = vst [vmem:[%s1851_s17] sm:$0xff] %v451_v36  ;;  %1617 = vmatmul.msk.f32.vlgmr.msra.gmra.mxu1 %vm241_vm0, %v451_v36 }
  0x96   : > { %v427_v37 = vpop.f32.mrf.mxu3 }
  0x97   : > { %v1860_v38 = vadd.f32 %v1840_v32, %v427_v37 }
  0x98   : > { %v358_v39 = vpop.f32.mrf.mxu0 }
  0x99   : > { %v475_v41 = vmax.f32 %v1860_v38, 0.0  ;;  %v1865_v42 = vadd.f32 %v1840_v32, %v358_v39 }
  0x9b   : > { %507 = vst [vmem:[%s1851_s17 + $0xc0] sm:$0xff] %v475_v41  ;;  %1602 = vmatmul.msk.f32.gmra.mxu0 %vm241_vm0, %v218_v40  ;;  %1641 = vmatmul.msk.f32.vlgmr.msrb.gmra.mxu3 %vm241_vm0, %v475_v41  ;;  %v452_v43 = vmax.f32 %v1865_v42, 0.0  ;;  %v1652_v41 = vld [vmem:[%s2618_s3 + $0x38] sm:$0xff] }
  0x9c   : > { %553 = vrot.lane.b32.xlu0 %v1865_v42, %s1719_s18  ;;  %1226 = vmatpush.msra.mxu2 %v1652_v41 }
  0x9d   : > { %484 = vst [vmem:[%s1851_s17 + $0x8] sm:$0xff] %v452_v43  ;;  %1618 = vmatmul.msk.f32.gmra.mxu1 %vm241_vm0, %v452_v43  ;;  %1695 = vmatpush.msra.mxu3 %v1652_v41 }
  0x9e   : > { %v430_v44 = vpop.f32.mrf.mxu3 }
  0x9f   : > { %v1876_v45 = vadd.f32 %v1840_v32, %v430_v44  ;;  %v1650_v44 = vld [vmem:[%s2618_s3 + $0x28] sm:$0xff] }
  0xa0   : > { %v361_v46 = vpop.f32.mrf.mxu0 }
  0xa1   : > { %v1880_v48 = vadd.f32 %v1840_v32, %v361_v46  ;;  %v476_v49 = vmax.f32 %v1876_v45, 0.0  ;;  %v1649_v46 = vld [vmem:[%s2618_s3 + $0x20] sm:$0xff] }
  0xa3   : > { %1603 = vmatmul.msk.f32.gmra.mxu0 %vm241_vm0, %v219_v47  ;;  %508 = vst [vmem:[%s1851_s17 + $0xc8] sm:$0xff] %v476_v49  ;;  %1642 = vmatmul.msk.f32.gmra.mxu3 %vm241_vm0, %v476_v49  ;;  %v453_v50 = vmax.f32 %v1880_v48, 0.0 }
  0xa4   : > { %555 = vrot.lane.b32.xlu1 %v1880_v48, %s1719_s18 }
  0xa5   : > { %485 = vst [vmem:[%s1851_s17 + $0x10] sm:$0xff] %v453_v50  ;;  %1619 = vmatmul.msk.f32.gmra.mxu1 %vm241_vm0, %v453_v50 }
  0xa6   : > { %v433_v51 = vpop.f32.mrf.mxu3 }
  0xa7   : > { %v1892_v52 = vadd.f32 %v1840_v32, %v433_v51 }
  0xa8   : > { %v364_v53 = vpop.f32.mrf.mxu0 }
  0xa9   : > { %v1896_v55 = vadd.f32 %v1840_v32, %v364_v53  ;;  %v477_v56 = vmax.f32 %v1892_v52, 0.0 }
  0xab   : > { %1604 = vmatmul.msk.f32.gmra.mxu0 %vm241_vm0, %v220_v54  ;;  %509 = vst [vmem:[%s1851_s17 + $0xd0] sm:$0xff] %v477_v56  ;;  %1643 = vmatmul.msk.f32.gmra.mxu3 %vm241_vm0, %v477_v56  ;;  %v454_v57 = vmax.f32 %v1896_v55, 0.0 }
  0xac   : > { %557 = vrot.lane.b32.xlu1 %v1896_v55, %s1719_s18 }
  0xad   : > { %486 = vst [vmem:[%s1851_s17 + $0x18] sm:$0xff] %v454_v57  ;;  %1620 = vmatmul.msk.f32.gmra.mxu1 %vm241_vm0, %v454_v57 }
  0xae   : > { %v436_v58 = vpop.f32.mrf.mxu3 }
  0xaf   : > { %v1908_v59 = vadd.f32 %v1840_v32, %v436_v58 }
  0xb0   : > { %v367_v60 = vpop.f32.mrf.mxu0 }
  0xb1   : > { %v1912_v62 = vadd.f32 %v1840_v32, %v367_v60  ;;  %v478_v63 = vmax.f32 %v1908_v59, 0.0 }
  0xb3   : > { %1605 = vmatmul.msk.f32.gmra.mxu0 %vm241_vm0, %v221_v61  ;;  %510 = vst [vmem:[%s1851_s17 + $0xd8] sm:$0xff] %v478_v63  ;;  %1644 = vmatmul.msk.f32.gmra.mxu3 %vm241_vm0, %v478_v63  ;;  %v455_v0 = vmax.f32 %v1912_v62, 0.0 }
  0xb4   : > { %559 = vrot.lane.b32.xlu2 %v1912_v62, %s1719_s18  ;;  %601 = vrot.lane.b32.xlu1 %v1876_v45, %s1719_s18 }
  0xb5   : > { %487 = vst [vmem:[%s1851_s17 + $0x20] sm:$0xff] %v455_v0  ;;  %1621 = vmatmul.msk.f32.gmra.mxu1 %vm241_vm0, %v455_v0 }
  0xb6   : > { %v439_v1 = vpop.f32.mrf.mxu3 }
  0xb7   : > { %v1926_v2 = vadd.f32 %v1840_v32, %v439_v1 }
  0xb8   : > { %v370_v3 = vpop.f32.mrf.mxu0 }
  0xb9   : > { %v1930_v5 = vadd.f32 %v1840_v32, %v370_v3  ;;  %v479_v6 = vmax.f32 %v1926_v2, 0.0 }
  0xbb   : > { %1606 = vmatmul.msk.f32.gmra.mxu0 %vm241_vm0, %v222_v4  ;;  %511 = vst [vmem:[%s1851_s17 + $0xe0] sm:$0xff] %v479_v6  ;;  %1645 = vmatmul.msk.f32.gmra.mxu3 %vm241_vm0, %v479_v6  ;;  %v456_v7 = vmax.f32 %v1930_v5, 0.0 }
  0xbc   : > { %561 = vrot.lane.b32.xlu2 %v1930_v5, %s1719_s18 }
  0xbd   : > { %488 = vst [vmem:[%s1851_s17 + $0x28] sm:$0xff] %v456_v7  ;;  %1622 = vmatmul.msk.f32.gmra.mxu1 %vm241_vm0, %v456_v7 }
  0xbe   : > { %v442_v8 = vpop.f32.mrf.mxu3 }
  0xbf   : > { %v1942_v9 = vadd.f32 %v1840_v32, %v442_v8 }
  0xc0   : > { %v373_v10 = vpop.f32.mrf.mxu0 }
  0xc1   : > { %v1946_v12 = vadd.f32 %v1840_v32, %v373_v10  ;;  %v480_v13 = vmax.f32 %v1942_v9, 0.0 }
  0xc3   : > { %1607 = vmatmul.msk.f32.gmra.mxu0 %vm241_vm0, %v223_v11  ;;  %512 = vst [vmem:[%s1851_s17 + $0xe8] sm:$0xff] %v480_v13  ;;  %1646 = vmatmul.msk.f32.gmra.mxu3 %vm241_vm0, %v480_v13  ;;  %v457_v14 = vmax.f32 %v1946_v12, 0.0 }
  0xc4   : > { %603 = vrot.lane.b32.xlu2 %v1892_v52, %s1719_s18  ;;  %563 = vrot.lane.b32.xlu0 %v1946_v12, %s1719_s18 }
  0xc5   : > { %489 = vst [vmem:[%s1851_s17 + $0x30] sm:$0xff] %v457_v14  ;;  %1623 = vmatmul.msk.f32.gmra.mxu1 %vm241_vm0, %v457_v14 }
  0xc6   : > { %v445_v15 = vpop.f32.mrf.mxu3 }
  0xc7   : > { %v1960_v16 = vadd.f32 %v1840_v32, %v445_v15 }
  0xc8   : > { %v376_v17 = vpop.f32.mrf.mxu0 }
  0xc9   : > { %v1964_v19 = vadd.f32 %v1840_v32, %v376_v17  ;;  %v481_v20 = vmax.f32 %v1960_v16, 0.0 }
  0xcb   : > { %1608 = vmatmul.msk.f32.gmra.mxu0 %vm241_vm0, %v224_v18  ;;  %565 = vrot.lane.b32.xlu1 %v1964_v19, %s1719_s18  ;;  %v458_v21 = vmax.f32 %v1964_v19, 0.0  ;;  %513 = vst [vmem:[%s1851_s17 + $0xf0] sm:$0xff] %v481_v20 }
  0xcc   : > { %599 = vrot.lane.b32.xlu0 %v1860_v38, %s1719_s18  ;;  %1647 = vmatmul.msk.f32.gmra.mxu3 %vm241_vm0, %v481_v20 }
  0xcd   : > { %490 = vst [vmem:[%s1851_s17 + $0x38] sm:$0xff] %v458_v21  ;;  %1624 = vmatmul.msk.f32.gmra.mxu1 %vm241_vm0, %v458_v21 }
  0xce   : > { %v448_v22 = vpop.f32.mrf.mxu3 }
  0xcf   : > { %v1978_v23 = vadd.f32 %v1840_v32, %v448_v22 }
  0xd0   : > { %v379_v24 = vpop.f32.mrf.mxu0 }
  0xd1   : > { %v1981_v25 = vadd.f32 %v1840_v32, %v379_v24  ;;  %v482_v26 = vmax.f32 %v1978_v23, 0.0 }
  0xd3   : > { %567 = vrot.lane.b32.xlu2 %v1981_v25, %s1719_s18  ;;  %607 = vrot.lane.b32.xlu1 %v1926_v2, %s1719_s18  ;;  %v459_v27 = vmax.f32 %v1981_v25, 0.0  ;;  %514 = vst [vmem:[%s1851_s17 + $0xf8] sm:$0xff] %v482_v26 }
  0xd4   : > { %605 = vrot.lane.b32.xlu0 %v1908_v59, %s1719_s18  ;;  %1648 = vmatmul.msk.f32.gmra.mxu3 %vm241_vm0, %v482_v26 }
  0xd5   : > { %491 = vst [vmem:[%s1851_s17 + $0x40] sm:$0xff] %v459_v27  ;;  %1625 = vmatmul.msk.f32.gmra.mxu1 %vm241_vm0, %v459_v27 }
  0xd8   : > { %v382_v28 = vpop.f32.mrf.mxu0 }
  0xd9   : > { %v383_v29 = vadd.f32 %v1840_v32, %v382_v28 }
  0xdb   : > { %609 = vrot.lane.b32.xlu2 %v1942_v9, %s1719_s18  ;;  %613 = vrot.lane.b32.xlu1 %v1978_v23, %s1719_s18  ;;  %v460_v30 = vmax.f32 %v383_v29, 0.0 }
  0xdc   : > { %569 = vrot.lane.b32.xlu0 %v383_v29, %s1719_s18 }
  0xdd   : > { %492 = vst [vmem:[%s1851_s17 + $0x48] sm:$0xff] %v460_v30  ;;  %1626 = vmatmul.msk.f32.gmra.mxu1 %vm241_vm0, %v460_v30 }
  0xe0   : > { %v385_v31 = vpop.f32.mrf.mxu0 }
  0xe1   : > { %v386_v33 = vadd.f32 %v1840_v32, %v385_v31 }
  0xe3   : > { %571 = vrot.lane.b32.xlu1 %v386_v33, %s1719_s18  ;;  %1056 = vrot.lane.b32.xlu2 %v1865_v42, %s1720_s19  ;;  %v461_v34 = vmax.f32 %v386_v33, 0.0 }
  0xe4   : > { %611 = vrot.lane.b32.xlu0 %v1960_v16, %s1719_s18 }
  0xe5   : > { %493 = vst [vmem:[%s1851_s17 + $0x50] sm:$0xff] %v461_v34  ;;  %1627 = vmatmul.msk.f32.gmra.mxu1 %vm241_vm0, %v461_v34 }
  0xe8   : > { %v388_v36 = vpop.f32.mrf.mxu0 }
  0xe9   : > { %v389_v37 = vadd.f32 %v1840_v32, %v388_v36 }
  0xeb   : > { %573 = vrot.lane.b32.xlu2 %v389_v37, %s1719_s18  ;;  %1054 = vrot.lane.b32.xlu1 %v1844_v35, %s1720_s19  ;;  %v462_v39 = vmax.f32 %v389_v37, 0.0  ;;  %v1651_v35 = vld [vmem:[%s2618_s3 + $0x30] sm:$0xff] }
  0xec   : > { %1058 = vrot.lane.b32.xlu0 %v1880_v48, %s1720_s19  ;;  %1227 = vmatpush.msra.mxu2 %v1651_v35 }
  0xed   : > { %494 = vst [vmem:[%s1851_s17 + $0x58] sm:$0xff] %v462_v39  ;;  %1628 = vmatmul.msk.f32.gmra.mxu1 %vm241_vm0, %v462_v39  ;;  %1696 = vmatpush.msra.mxu3 %v1651_v35 }
  0xee   : > { %1228 = vmatpush.msra.mxu2 %v1650_v44 }
  0xef   : > { %1697 = vmatpush.msra.mxu3 %v1650_v44 }
  0xf0   : > { %v391_v40 = vpop.f32.mrf.mxu0  ;;  %1229 = vmatpush.msra.mxu2 %v1649_v46 }
  0xf1   : > { %v2023_v42 = vadd.f32 %v1840_v32, %v391_v40  ;;  %1698 = vmatpush.msra.mxu3 %v1649_v46 }
  0xf3   : > { %1062 = vrot.lane.b32.xlu2 %v1912_v62, %s1720_s19  ;;  %1060 = vrot.lane.b32.xlu1 %v1896_v55, %s1720_s19  ;;  %v463_v43 = vmax.f32 %v2023_v42, 0.0 }
  0xf4   : > { %575 = vrot.lane.b32.xlu0 %v2023_v42, %s1719_s18 }
  0xf5   : > { %495 = vst [vmem:[%s1851_s17 + $0x60] sm:$0xff] %v463_v43  ;;  %1629 = vmatmul.msk.f32.gmra.mxu1 %vm241_vm0, %v463_v43 }
  0xf8   : > { %v394_v47 = vpop.f32.mrf.mxu0 }
  0xf9   : > { %v2044_v48 = vadd.f32 %v1840_v32, %v394_v47 }
  0xfb   : > { %1068 = vrot.lane.b32.xlu2 %v1964_v19, %s1720_s19  ;;  %577 = vrot.lane.b32.xlu1 %v2044_v48, %s1719_s18  ;;  %v464_v49 = vmax.f32 %v2044_v48, 0.0 }
  0xfc   : > { %1064 = vrot.lane.b32.xlu0 %v1930_v5, %s1720_s19 }
  0xfd   : > { %496 = vst [vmem:[%s1851_s17 + $0x68] sm:$0xff] %v464_v49  ;;  %1630 = vmatmul.msk.f32.gmra.mxu1 %vm241_vm0, %v464_v49 }
 0x100   : > { %v397_v50 = vpop.f32.mrf.mxu0 }
 0x101   : > { %v2056_v51 = vadd.f32 %v1840_v32, %v397_v50 }
 0x103   : > { %579 = vrot.lane.b32.xlu2 %v2056_v51, %s1719_s18  ;;  %1066 = vrot.lane.b32.xlu1 %v1946_v12, %s1720_s19  ;;  %v465_v53 = vmax.f32 %v2056_v51, 0.0 }
 0x104   : > { %1070 = vrot.lane.b32.xlu0 %v1981_v25, %s1720_s19 }
 0x105   : > { %497 = vst [vmem:[%s1851_s17 + $0x70] sm:$0xff] %v465_v53  ;;  %1631 = vmatmul.msk.f32.gmra.mxu1 %vm241_vm0, %v465_v53  ;;  %v552_v57 = vpop.permute.xlu0 %551 }
 0x108   : > { %v400_v54 = vpop.f32.mrf.mxu0 }
 0x109   : > { %v2068_v55 = vadd.f32 %v1840_v32, %v400_v54 }
 0x10b   : > { %1074 = vrot.lane.b32.xlu2 %v386_v33, %s1720_s19  ;;  %1072 = vrot.lane.b32.xlu1 %v383_v29, %s1720_s19  ;;  %v466_v56 = vmax.f32 %v2068_v55, 0.0 }
 0x10c   : > { %581 = vrot.lane.b32.xlu0 %v2068_v55, %s1719_s18 }
 0x10d   : > { %498 = vst [vmem:[%s1851_s17 + $0x78] sm:$0xff] %v466_v56  ;;  %1632 = vmatmul.msk.f32.gmra.mxu1 %vm241_vm0, %v466_v56 }
 0x10e   : > { %v2077_v60 = vpop.permute.xlu2 %559  ;;  %v554_v6 = vpop.permute.xlu0 %553 }
 0x110   : > { %v403_v58 = vpop.f32.mrf.mxu0 }
 0x111   : > { %v2080_v61 = vadd.f32 %v1840_v32, %v403_v58 }
 0x112   : > { %v760_v62 = vpop.f32.mrf.mxu1 }
 0x113   : > { %v761_v63 = vadd.f32 %v760_v62, %v552_v57  ;;  %583 = vrot.lane.b32.xlu1 %v2080_v61, %s1719_s18  ;;  %v467_v0 = vmax.f32 %v2080_v61, 0.0 }
 0x114   : > { %1076 = vrot.lane.b32.xlu0 %v389_v37, %s1720_s19 }
 0x115   : > { %v856_v1 = vmax.f32 %v761_v63, 0.0  ;;  %499 = vst [vmem:[%s1851_s17 + $0x80] sm:$0xff] %v467_v0  ;;  %1633 = vmatmul.msk.f32.gmra.mxu1 %vm241_vm0, %v467_v0 }
 0x116   : > { %v556_v3 = vpop.permute.xlu1 %555  ;;  %v562_v8 = vpop.permute.xlu2 %561 }
 0x117   : > { %920 = vrot.lane.b32.xlu2 %v856_v1, %s1721_s28  ;;  %1653 = vmatmul.msk.f32.vlgmr.msra.gmra.mxu2 %vm241_vm0, %v856_v1 }
 0x118   : > { %v406_v4 = vpop.f32.mrf.mxu0 }
 0x119   : > { %v2091_v5 = vadd.f32 %v1840_v32, %v406_v4 }
 0x11a   : > { %v763_v7 = vpop.f32.mrf.mxu1 }
 0x11b   : > { %v764_v10 = vadd.f32 %v763_v7, %v554_v6  ;;  %1078 = vrot.lane.b32.xlu1 %v2023_v42, %s1720_s19  ;;  %v468_v11 = vmax.f32 %v2091_v5, 0.0 }
 0x11d   : > { %v857_v12 = vmax.f32 %v764_v10, 0.0  ;;  %500 = vst [vmem:[%s1851_s17 + $0x88] sm:$0xff] %v468_v11  ;;  %1634 = vmatmul.msk.f32.gmra.mxu1 %vm241_vm0, %v468_v11 }
 0x11e   : > { %v558_v13 = vpop.permute.xlu1 %557  ;;  %v832_v14 = vpop.f32.mrf.mxu3 }
 0x11f   : > { %922 = vrot.lane.b32.xlu0 %v857_v12, %s1721_s28  ;;  %585 = vrot.lane.b32.xlu2 %v2091_v5, %s1719_s18  ;;  %v604_v21 = vpop.permute.xlu2 %603 }
 0x120   : > { %1654 = vmatmul.msk.f32.gmra.mxu2 %vm241_vm0, %v857_v12  ;;  %v409_v15 = vpop.f32.mrf.mxu0 }
 0x121   : > { %v2103_v17 = vadd.f32 %v1840_v32, %v409_v15 }
 0x122   : > { %v766_v18 = vpop.f32.mrf.mxu1 }
 0x123   : > { %v767_v19 = vadd.f32 %v766_v18, %v556_v3  ;;  %v469_v20 = vmax.f32 %v2103_v17, 0.0 }
 0x125   : > { %v858_v22 = vmax.f32 %v767_v19, 0.0  ;;  %501 = vst [vmem:[%s1851_s17 + $0x90] sm:$0xff] %v469_v20  ;;  %1635 = vmatmul.msk.f32.gmra.mxu1 %vm241_vm0, %v469_v20 }
 0x126   : > { %v602_v24 = vpop.permute.xlu1 %601  ;;  %v835_v25 = vpop.f32.mrf.mxu3 }
 0x127   : > { %924 = vrot.lane.b32.xlu1 %v858_v22, %s1721_s28  ;;  %587 = vrot.lane.b32.xlu0 %v2103_v17, %s1719_s18  ;;  %v2112_v27 = vadd.f32 %v835_v25, %v602_v24 }
 0x128   : > { %1655 = vmatmul.msk.f32.gmra.mxu2 %vm241_vm0, %v858_v22  ;;  %v412_v26 = vpop.f32.mrf.mxu0 }
 0x129   : > { %v2115_v28 = vadd.f32 %v1840_v32, %v412_v26  ;;  %v881_v33 = vmax.f32 %v2112_v27, 0.0 }
 0x12a   : > { %v769_v29 = vpop.f32.mrf.mxu1 }
 0x12b   : > { %v2117_v30 = vadd.f32 %v769_v29, %v558_v13  ;;  %v470_v31 = vmax.f32 %v2115_v28, 0.0 }
 0x12d   : > { %v859_v34 = vmax.f32 %v2117_v30, 0.0  ;;  %v2122_v36 = vpop.permute.xlu2 %567  ;;  %502 = vst [vmem:[%s1851_s17 + $0x98] sm:$0xff] %v470_v31  ;;  %1636 = vmatmul.msk.f32.gmra.mxu1 %vm241_vm0, %v470_v31 }
 0x12e   : > { %v838_v37 = vpop.f32.mrf.mxu3 }
 0x12f   : > { %589 = vrot.lane.b32.xlu1 %v2115_v28, %s1719_s18  ;;  %970 = vrot.lane.b32.xlu0 %v881_v33, %s1721_s28  ;;  %v2134_v40 = vadd.f32 %v838_v37, %v604_v21 }
 0x130   : > { %1656 = vmatmul.msk.f32.gmra.mxu2 %vm241_vm0, %v859_v34  ;;  %v415_v39 = vpop.f32.mrf.mxu0 }
 0x131   : > { %v2137_v41 = vadd.f32 %v1840_v32, %v415_v39  ;;  %v882_v44 = vmax.f32 %v2134_v40, 0.0 }
 0x132   : > { %v772_v42 = vpop.f32.mrf.mxu1 }
 0x133   : > { %v773_v35 = vadd.f32 %v772_v42, %v2077_v60  ;;  %v471_v43 = vmax.f32 %v2137_v41, 0.0 }
 0x135   : > { %v860_v46 = vmax.f32 %v773_v35, 0.0  ;;  %v2142_v47 = vpop.permute.xlu2 %609  ;;  %503 = vst [vmem:[%s1851_s17 + $0xa0] sm:$0xff] %v471_v43  ;;  %1637 = vmatmul.msk.f32.gmra.mxu1 %vm241_vm0, %v471_v43 }
 0x136   : > { %v564_v49 = vpop.permute.xlu0 %563  ;;  %v841_v54 = vpop.f32.mrf.mxu3 }
 0x137   : > { %972 = vrot.lane.b32.xlu1 %v882_v44, %s1721_s28  ;;  %928 = vrot.lane.b32.xlu0 %v860_v46, %s1721_s28 }
 0x138   : > { %1657 = vmatmul.msk.f32.gmra.mxu2 %vm241_vm0, %v860_v46  ;;  %v418_v50 = vpop.f32.mrf.mxu0 }
 0x139   : > { %v2152_v53 = vadd.f32 %v1840_v32, %v418_v50 }
 0x13a   : > { %v775_v56 = vpop.f32.mrf.mxu1 }
 0x13b   : > { %v776_v57 = vadd.f32 %v775_v56, %v562_v8  ;;  %v472_v58 = vmax.f32 %v2152_v53, 0.0 }
 0x13d   : > { %v861_v60 = vmax.f32 %v776_v57, 0.0  ;;  %v566_v62 = vpop.permute.xlu1 %565  ;;  %v2155_v63 = vpop.permute.xlu2 %1056  ;;  %504 = vst [vmem:[%s1851_s17 + $0xa8] sm:$0xff] %v472_v58  ;;  %1638 = vmatmul.msk.f32.gmra.mxu1 %vm241_vm0, %v472_v58 }
 0x13e   : > { %v600_v0 = vpop.permute.xlu0 %599  ;;  %v844_v11 = vpop.f32.mrf.mxu3 }
 0x13f   : > { %v833_v1 = vadd.f32 %v832_v14, %v600_v0  ;;  %930 = vrot.lane.b32.xlu1 %v861_v60, %s1721_s28  ;;  %593 = vrot.lane.b32.xlu0 %v2152_v53, %s1719_s18 }
 0x140   : > { %1658 = vmatmul.msk.f32.gmra.mxu2 %vm241_vm0, %v861_v60  ;;  %v421_v3 = vpop.f32.mrf.mxu0 }
 0x141   : > { %v880_v4 = vmax.f32 %v833_v1, 0.0  ;;  %v2164_v6 = vadd.f32 %v1840_v32, %v421_v3 }
 0x142   : > { %v778_v7 = vpop.f32.mrf.mxu1 }
 0x143   : > { %v779_v8 = vadd.f32 %v778_v7, %v564_v49  ;;  %1677 = vmatmul.msk.f32.vlgmr.msra.gmra.mxu3 %vm241_vm0, %v880_v4  ;;  %968 = vrot.lane.b32.xlu2 %v880_v4, %s1721_s28  ;;  %v473_v10 = vmax.f32 %v2164_v6, 0.0 }
 0x145   : > { %v862_v12 = vmax.f32 %v779_v8, 0.0  ;;  %v608_v13 = vpop.permute.xlu1 %607  ;;  %v2169_v14 = vpop.permute.xlu2 %573  ;;  %505 = vst [vmem:[%s1851_s17 + $0xb0] sm:$0xff] %v473_v10  ;;  %1639 = vmatmul.msk.f32.gmra.mxu1 %vm241_vm0, %v473_v10 }
 0x146   : > { %v845_v15 = vadd.f32 %v844_v11, %v608_v13  ;;  %v606_v18 = vpop.permute.xlu0 %605 }
 0x147   : > { %595 = vrot.lane.b32.xlu1 %v2164_v6, %s1719_s18 }
 0x148   : > { %v884_v19 = vmax.f32 %v845_v15, 0.0  ;;  %1659 = vmatmul.msk.f32.gmra.mxu2 %vm241_vm0, %v862_v12  ;;  %v424_v20 = vpop.f32.mrf.mxu0 }
 0x149   : > { %v2177_v21 = vadd.f32 %v1840_v32, %v424_v20 }
 0x14a   : > { %v781_v22 = vpop.f32.mrf.mxu1  ;;  %976 = vrot.lane.b32.xlu0 %v884_v19, %s1721_s28 }
 0x14b   : > { %v2180_v24 = vadd.f32 %v781_v22, %v566_v62  ;;  %1678 = vmatmul.msk.f32.gmra.mxu3 %vm241_vm0, %v881_v33  ;;  %926 = vrot.lane.b32.xlu2 %v859_v34, %s1721_s28  ;;  %v474_v25 = vmax.f32 %v2177_v21, 0.0  ;;  %v842_v33 = vadd.f32 %v841_v54, %v606_v18 }
 0x14d   : > { %v863_v26 = vmax.f32 %v2180_v24, 0.0  ;;  %v2190_v29 = vpop.permute.xlu1 %613  ;;  %v2192_v32 = vpop.permute.xlu2 %1062  ;;  %506 = vst [vmem:[%s1851_s17 + $0xb8] sm:$0xff] %v474_v25  ;;  %1640 = vmatmul.msk.f32.gmra.mxu1 %vm241_vm0, %v474_v25 }
 0x14e   : > { %v570_v31 = vpop.permute.xlu0 %569 }
 0x14f   : > { %1084 = vrot.lane.b32.xlu1 %v2068_v55, %s1720_s19 }
 0x150   : > { %1660 = vmatmul.msk.f32.gmra.mxu2 %vm241_vm0, %v863_v26 }
 0x152   : > { %v784_v27 = vpop.f32.mrf.mxu1  ;;  %1082 = vrot.lane.b32.xlu0 %v2056_v51, %s1720_s19  ;;  %v883_v51 = vmax.f32 %v842_v33, 0.0 }
 0x153   : > { %v2204_v30 = vadd.f32 %v784_v27, %v2122_v36  ;;  %1679 = vmatmul.msk.f32.gmra.mxu3 %vm241_vm0, %v882_v44  ;;  %591 = vrot.lane.b32.xlu2 %v2137_v41, %s1719_s18  ;;  %v847_v44 = vpop.f32.mrf.mxu3 }
 0x154   : > { %v848_v49 = vadd.f32 %v847_v44, %v2142_v47 }
 0x155   : > { %v864_v55 = vmax.f32 %v2204_v30, 0.0  ;;  %v572_v34 = vpop.permute.xlu1 %571  ;;  %v2212_v37 = vpop.permute.xlu2 %1068 }
 0x156   : > { %v612_v39 = vpop.permute.xlu0 %611 }
 0x157   : > { %1090 = vrot.lane.b32.xlu1 %v2103_v17, %s1720_s19 }
 0x158   : > { %1661 = vmatmul.msk.f32.gmra.mxu2 %vm241_vm0, %v864_v55 }
 0x15a   : > { %v787_v36 = vpop.f32.mrf.mxu1  ;;  %1088 = vrot.lane.b32.xlu0 %v2091_v5, %s1720_s19 }
 0x15b   : > { %v2221_v40 = vadd.f32 %v787_v36, %v570_v31  ;;  %1680 = vmatmul.msk.f32.gmra.mxu3 %vm241_vm0, %v883_v51  ;;  %974 = vrot.lane.b32.xlu2 %v883_v51, %s1721_s28  ;;  %v850_v56 = vpop.f32.mrf.mxu3 }
 0x15d   : > { %v865_v42 = vmax.f32 %v2221_v40, 0.0  ;;  %v2226_v35 = vpop.permute.xlu1 %1054  ;;  %v580_v43 = vpop.permute.xlu2 %579 }
 0x15e   : > { %v2228_v17 = vpop.permute.xlu0 %1058 }
 0x15f   : > { %1096 = vrot.lane.b32.xlu1 %v2152_v53, %s1720_s19 }
 0x160   : > { %1662 = vmatmul.msk.f32.gmra.mxu2 %vm241_vm0, %v865_v42 }
 0x162   : > { %v790_v5 = vpop.f32.mrf.mxu1  ;;  %1094 = vrot.lane.b32.xlu0 %v2137_v41, %s1720_s19  ;;  %v885_v41 = vmax.f32 %v848_v49, 0.0 }
 0x163   : > { %v2237_v46 = vadd.f32 %v790_v5, %v572_v34  ;;  %1681 = vmatmul.msk.f32.gmra.mxu3 %vm241_vm0, %v884_v19  ;;  %932 = vrot.lane.b32.xlu2 %v862_v12, %s1721_s28  ;;  %v853_v3 = vpop.f32.mrf.mxu3 }
 0x165   : > { %v866_v50 = vmax.f32 %v2237_v46, 0.0  ;;  %v2243_v53 = vpop.permute.xlu1 %1060  ;;  %v2250_v57 = vpop.permute.xlu2 %1074 }
 0x166   : > { %v576_v54 = vpop.permute.xlu0 %575 }
 0x167   : > { %1102 = vrot.lane.b32.xlu1 %v1860_v38, %s1720_s19  ;;  %v2258_v38 = vadd.f32 %v850_v56, %v612_v39 }
 0x168   : > { %1663 = vmatmul.msk.f32.gmra.mxu2 %vm241_vm0, %v866_v50 }
 0x16a   : > { %v793_v58 = vpop.f32.mrf.mxu1  ;;  %1106 = vrot.lane.b32.xlu0 %v1892_v52, %s1720_s19  ;;  %v886_v52 = vmax.f32 %v2258_v38, 0.0 }
 0x16b   : > { %v794_v47 = vadd.f32 %v793_v58, %v2169_v14  ;;  %1682 = vmatmul.msk.f32.gmra.mxu3 %vm241_vm0, %v885_v41  ;;  %597 = vrot.lane.b32.xlu2 %v2177_v21, %s1719_s18 }
 0x16d   : > { %v867_v60 = vmax.f32 %v794_v47, 0.0  ;;  %v578_v62 = vpop.permute.xlu1 %577 }
 0x16e   : > { %v2260_v0 = vpop.permute.xlu0 %1064 }
 0x16f   : > { %1108 = vrot.lane.b32.xlu1 %v1908_v59, %s1720_s19  ;;  %v854_v59 = vadd.f32 %v853_v3, %v2190_v29 }
 0x170   : > { %1664 = vmatmul.msk.f32.gmra.mxu2 %vm241_vm0, %v867_v60 }
 0x171   : > { %v921_v1 = vpop.permute.xlu2 %920 }
 0x172   : > { %1017 = vst.msk [vmem:[%s1851_s17] sm:$0xff] %vm1016_vm1, %v921_v1  ;;  %v796_v4 = vpop.f32.mrf.mxu1  ;;  %1112 = vrot.lane.b32.xlu0 %v1942_v9, %s1720_s19  ;;  %v887_v9 = vmax.f32 %v854_v59, 0.0 }
 0x173   : > { %v2270_v7 = vadd.f32 %v796_v4, %v576_v54  ;;  %1683 = vmatmul.msk.f32.gmra.mxu3 %vm241_vm0, %v886_v52  ;;  %1080 = vrot.lane.b32.xlu2 %v2044_v48, %s1720_s19 }
 0x175   : > { %v868_v8 = vmax.f32 %v2270_v7, 0.0  ;;  %v2279_v10 = vpop.permute.xlu1 %1066 }
 0x176   : > { %v2281_v11 = vpop.permute.xlu0 %1070 }
 0x177   : > { %1114 = vrot.lane.b32.xlu1 %v1960_v16, %s1720_s19 }
 0x178   : > { %1665 = vmatmul.msk.f32.gmra.mxu2 %vm241_vm0, %v868_v8 }
 0x179   : > { %v586_v29 = vpop.permute.xlu2 %585 }
 0x17a   : > { %v799_v12 = vpop.f32.mrf.mxu1  ;;  %1100 = vrot.lane.b32.xlu0 %v2177_v21, %s1720_s19 }
 0x17b   : > { %v800_v48 = vadd.f32 %v799_v12, %v578_v62  ;;  %1684 = vmatmul.msk.f32.gmra.mxu3 %vm241_vm0, %v887_v9  ;;  %1086 = vrot.lane.b32.xlu2 %v2080_v61, %s1720_s19 }
 0x17d   : > { %v869_v13 = vmax.f32 %v800_v48, 0.0  ;;  %v2293_v14 = vpop.permute.xlu1 %1072 }
 0x17e   : > { %v582_v15 = vpop.permute.xlu0 %581 }
 0x17f   : > { %978 = vrot.lane.b32.xlu1 %v885_v41, %s1721_s28 }
 0x180   : > { %1666 = vmatmul.msk.f32.gmra.mxu2 %vm241_vm0, %v869_v13 }
 0x182   : > { %v802_v16 = vpop.f32.mrf.mxu1  ;;  %934 = vrot.lane.b32.xlu0 %v863_v26, %s1721_s28 }
 0x183   : > { %v803_v18 = vadd.f32 %v802_v16, %v580_v43  ;;  %1092 = vrot.lane.b32.xlu2 %v2115_v28, %s1720_s19 }
 0x185   : > { %v870_v19 = vmax.f32 %v803_v18, 0.0  ;;  %v584_v61 = vpop.permute.xlu1 %583 }
 0x186   : > { %v2306_v20 = vpop.permute.xlu0 %1076 }
 0x187   : > { %936 = vrot.lane.b32.xlu1 %v864_v55, %s1721_s28 }
 0x188   : > { %1667 = vmatmul.msk.f32.gmra.mxu2 %vm241_vm0, %v870_v19 }
 0x18a   : > { %v805_v21 = vpop.f32.mrf.mxu1  ;;  %982 = vrot.lane.b32.xlu0 %v887_v9, %s1721_s28 }
 0x18b   : > { %v2309_v22 = vadd.f32 %v805_v21, %v582_v15  ;;  %1098 = vrot.lane.b32.xlu2 %v2164_v6, %s1720_s19 }
 0x18d   : > { %v871_v28 = vmax.f32 %v2309_v22, 0.0  ;;  %v2318_v24 = vpop.permute.xlu1 %1078 }
 0x18f   : > { %942 = vrot.lane.b32.xlu1 %v867_v60, %s1721_s28 }
 0x190   : > { %1668 = vmatmul.msk.f32.gmra.mxu2 %vm241_vm0, %v871_v28 }
 0x191   : > { %v923_v25 = vpop.permute.xlu0 %922 }
 0x192   : > { %1018 = vst.msk [vmem:[%s1851_s17 + $0x8] sm:$0xff] %vm1016_vm1, %v923_v25  ;;  %v808_v26 = vpop.f32.mrf.mxu1  ;;  %940 = vrot.lane.b32.xlu0 %v866_v50, %s1721_s28 }
 0x193   : > { %v809_v6 = vadd.f32 %v808_v26, %v584_v61  ;;  %1104 = vrot.lane.b32.xlu2 %v1876_v45, %s1720_s19 }
 0x195   : > { %v872_v31 = vmax.f32 %v809_v6, 0.0 }
 0x197   : > { %948 = vrot.lane.b32.xlu1 %v870_v19, %s1721_s28 }
 0x198   : > { %1669 = vmatmul.msk.f32.gmra.mxu2 %vm241_vm0, %v872_v31 }
 0x199   : > { %v925_v27 = vpop.permute.xlu1 %924  ;;  %v588_v30 = vpop.permute.xlu0 %587 }
 0x19a   : > { %1019 = vst.msk [vmem:[%s1851_s17 + $0x10] sm:$0xff] %vm1016_vm1, %v925_v27  ;;  %v811_v33 = vpop.f32.mrf.mxu1  ;;  %946 = vrot.lane.b32.xlu0 %v869_v13, %s1721_s28  ;;  %v1231_v55 = vpop.f32.mrf.mxu2 }
 0x19b   : > { %v812_v34 = vadd.f32 %v811_v33, %v586_v29  ;;  %1110 = vrot.lane.b32.xlu2 %v1926_v2, %s1720_s19  ;;  %v1232_v5 = vadd.f32 %v1231_v55, %v2226_v35 }
 0x19d   : > { %v873_v45 = vmax.f32 %v812_v34, 0.0  ;;  %v969_v39 = vpop.permute.xlu2 %968  ;;  %v1327_v56 = vmax.f32 %v1232_v5, 0.0 }
 0x19e   : > { %1041 = vst.msk [vmem:[%s1851_s17 + $0xc0] sm:$0xff] %vm1016_vm1, %v969_v39 }
 0x19f   : > { %954 = vrot.lane.b32.xlu1 %v873_v45, %s1721_s28 }
 0x1a0   : > { %1670 = vmatmul.msk.f32.gmra.mxu2 %vm241_vm0, %v873_v45 }
 0x1a1   : > { %v590_v51 = vpop.permute.xlu1 %589  ;;  %v971_v36 = vpop.permute.xlu0 %970 }
 0x1a2   : > { %1042 = vst.msk [vmem:[%s1851_s17 + $0xc8] sm:$0xff] %vm1016_vm1, %v971_v36  ;;  %v814_v43 = vpop.f32.mrf.mxu1  ;;  %952 = vrot.lane.b32.xlu0 %v872_v31, %s1721_s28 }
 0x1a3   : > { %v815_v44 = vadd.f32 %v814_v43, %v588_v30  ;;  %1116 = vrot.lane.b32.xlu2 %v1978_v23, %s1720_s19  ;;  %v1234_v2 = vpop.f32.mrf.mxu2 }
 0x1a4   : > { %v1235_v46 = vadd.f32 %v1234_v2, %v2155_v63 }
 0x1a5   : > { %v874_v49 = vmax.f32 %v815_v44, 0.0  ;;  %v927_v50 = vpop.permute.xlu2 %926 }
 0x1a6   : > { %v1328_v54 = vmax.f32 %v1235_v46, 0.0  ;;  %1020 = vst.msk [vmem:[%s1851_s17 + $0x18] sm:$0xff] %vm1016_vm1, %v927_v50 }
 0x1a8   : > { %1671 = vmatmul.msk.f32.gmra.mxu2 %vm241_vm0, %v874_v49  ;;  %1393 = vrot.lane.b32.xlu1 %v1328_v54, %s1720_s19 }
 0x1a9   : > { %v973_v41 = vpop.permute.xlu1 %972  ;;  %v929_v58 = vpop.permute.xlu0 %928 }
 0x1aa   : > { %1043 = vst.msk [vmem:[%s1851_s17 + $0xd0] sm:$0xff] %vm1016_vm1, %v973_v41  ;;  %v817_v23 = vpop.f32.mrf.mxu1  ;;  %1391 = vrot.lane.b32.xlu0 %v1327_v56, %s1720_s19 }
 0x1ab   : > { %1021 = vst.msk [vmem:[%s1851_s17 + $0x20] sm:$0xff] %vm1016_vm1, %v929_v58  ;;  %v2354_v63 = vadd.f32 %v817_v23, %v590_v51  ;;  %980 = vrot.lane.b32.xlu2 %v886_v52, %s1721_s28  ;;  %v1237_v35 = vpop.f32.mrf.mxu2 }
 0x1ac   : > { %v1238_v31 = vadd.f32 %v1237_v35, %v2228_v17 }
 0x1ad   : > { %v875_v47 = vmax.f32 %v2354_v63, 0.0  ;;  %v592_v60 = vpop.permute.xlu2 %591 }
 0x1ae   : > { %v1329_v33 = vmax.f32 %v1238_v31, 0.0 }
 0x1b0   : > { %1672 = vmatmul.msk.f32.gmra.mxu2 %vm241_vm0, %v875_v47 }
 0x1b1   : > { %v931_v62 = vpop.permute.xlu1 %930  ;;  %v594_v52 = vpop.permute.xlu0 %593 }
 0x1b2   : > { %1022 = vst.msk [vmem:[%s1851_s17 + $0x28] sm:$0xff] %vm1016_vm1, %v931_v62  ;;  %v820_v1 = vpop.f32.mrf.mxu1 }
 0x1b3   : > { %v2365_v3 = vadd.f32 %v820_v1, %v592_v60  ;;  %938 = vrot.lane.b32.xlu2 %v865_v42, %s1721_s28  ;;  %v1240_v38 = vpop.f32.mrf.mxu2 }
 0x1b4   : > { %v1241_v23 = vadd.f32 %v1240_v38, %v2243_v53 }
 0x1b5   : > { %v876_v4 = vmax.f32 %v2365_v3, 0.0  ;;  %v975_v59 = vpop.permute.xlu2 %974 }
 0x1b6   : > { %1044 = vst.msk [vmem:[%s1851_s17 + $0xd8] sm:$0xff] %vm1016_vm1, %v975_v59  ;;  %v1330_v1 = vmax.f32 %v1241_v23, 0.0 }
 0x1b8   : > { %1673 = vmatmul.msk.f32.gmra.mxu2 %vm241_vm0, %v876_v4 }
 0x1b9   : > { %v596_v9 = vpop.permute.xlu1 %595 }
 0x1ba   : > { %v823_v12 = vpop.f32.mrf.mxu1 }
 0x1bb   : > { %v824_v48 = vadd.f32 %v823_v12, %v594_v52  ;;  %944 = vrot.lane.b32.xlu2 %v868_v8, %s1721_s28  ;;  %v2379_v40 = vpop.f32.mrf.mxu2 }
 0x1bc   : > { %v977_v42 = vpop.permute.xlu0 %976 }
 0x1bd   : > { %v877_v13 = vmax.f32 %v824_v48, 0.0  ;;  %1045 = vst.msk [vmem:[%s1851_s17 + $0xe0] sm:$0xff] %vm1016_vm1, %v977_v42  ;;  %v933_v15 = vpop.permute.xlu2 %932 }
 0x1be   : > { %1023 = vst.msk [vmem:[%s1851_s17 + $0x30] sm:$0xff] %vm1016_vm1, %v933_v15 }
 0x1c0   : > { %1674 = vmatmul.msk.f32.gmra.mxu2 %vm241_vm0, %v877_v13 }
 0x1c1   : > { %v2386_v16 = vpop.permute.xlu1 %1084 }
 0x1c2   : > { %v826_v18 = vpop.f32.mrf.mxu1 }
 0x1c3   : > { %v2388_v19 = vadd.f32 %v826_v18, %v596_v9  ;;  %950 = vrot.lane.b32.xlu2 %v871_v28, %s1721_s28  ;;  %v1246_v7 = vpop.f32.mrf.mxu2 }
 0x1c4   : > { %v2393_v8 = vpop.permute.xlu0 %1082  ;;  %v1247_v60 = vadd.f32 %v1246_v7, %v2260_v0 }
 0x1c5   : > { %v878_v61 = vmax.f32 %v2388_v19, 0.0  ;;  %v598_v21 = vpop.permute.xlu2 %597 }
 0x1c6   : > { %v1303_v25 = vpop.f32.mrf.mxu3  ;;  %v1332_v63 = vmax.f32 %v1247_v60, 0.0 }
 0x1c8   : > { %1675 = vmatmul.msk.f32.gmra.mxu2 %vm241_vm0, %v878_v61 }
 0x1c9   : > { %v2399_v26 = vpop.permute.xlu1 %1090 }
 0x1ca   : > { %v829_v6 = vpop.f32.mrf.mxu1 }
 0x1cb   : > { %v2401_v29 = vadd.f32 %v829_v6, %v598_v21  ;;  %956 = vrot.lane.b32.xlu2 %v874_v49, %s1721_s28  ;;  %v2404_v22 = vpop.f32.mrf.mxu2 }
 0x1cc   : > { %v2406_v28 = vpop.permute.xlu0 %1088 }
 0x1cd   : > { %v879_v27 = vmax.f32 %v2401_v29, 0.0  ;;  %v2410_v30 = vpop.permute.xlu2 %1080 }
 0x1ce   : > { %v1306_v34 = vpop.f32.mrf.mxu3 }
 0x1d0   : > { %1676 = vmatmul.msk.f32.gmra.mxu2 %vm241_vm0, %v879_v27 }
 0x1d1   : > { %v2415_v55 = vpop.permute.xlu1 %1096 }
 0x1d3   : > { %v2417_v45 = vpop.f32.mrf.mxu2  ;;  %1395 = vrot.lane.b32.xlu2 %v1329_v33, %s1720_s19 }
 0x1d4   : > { %v2420_v39 = vpop.permute.xlu0 %1094 }
 0x1d5   : > { %v2422_v51 = vpop.permute.xlu2 %1086 }
 0x1d6   : > { %v1309_v44 = vpop.f32.mrf.mxu3 }
 0x1d9   : > { %v1103_v17 = vpop.permute.xlu1 %1102 }
 0x1da   : > { %v1304_v36 = vadd.f32 %v1303_v25, %v1103_v17  ;;  %v1244_v25 = vadd.f32 %v2379_v40, %v2192_v32 }
 0x1db   : > { %v1255_v43 = vpop.f32.mrf.mxu2 }
 0x1dc   : > { %v1351_v2 = vmax.f32 %v1304_v36, 0.0  ;;  %v1107_v5 = vpop.permute.xlu0 %1106  ;;  %v1256_v0 = vadd.f32 %v1255_v43, %v2281_v11  ;;  %v1331_v3 = vmax.f32 %v1244_v25, 0.0 }
 0x1dd   : > { %v1310_v46 = vadd.f32 %v1309_v44, %v1107_v5  ;;  %v2424_v49 = vpop.permute.xlu2 %1092 }
 0x1de   : > { %1439 = vrot.lane.b32.xlu0 %v1351_v2, %s1720_s19  ;;  %v1335_v18 = vmax.f32 %v1256_v0, 0.0 }
 0x1df   : > { %v1353_v50 = vmax.f32 %v1310_v46, 0.0 }
 0x1e1   : > { %v1109_v54 = vpop.permute.xlu1 %1108  ;;  %1443 = vrot.lane.b32.xlu2 %v1353_v50, %s1720_s19 }
 0x1e3   : > { %v1258_v56 = vpop.f32.mrf.mxu2 }
 0x1e4   : > { %v2428_v41 = vpop.permute.xlu0 %1112 }
 0x1e5   : > { %v2430_v58 = vpop.permute.xlu2 %1098 }
 0x1e6   : > { %958 = vrot.lane.b32.xlu0 %v875_v47, %s1721_s28  ;;  %v1312_v47 = vpop.f32.mrf.mxu3 }
 0x1e7   : > { %v1313_v53 = vadd.f32 %v1312_v47, %v1109_v54 }
 0x1e9   : > { %v2436_v35 = vpop.permute.xlu1 %1114  ;;  %962 = vrot.lane.b32.xlu2 %v877_v13, %s1721_s28  ;;  %v1354_v42 = vmax.f32 %v1313_v53, 0.0 }
 0x1eb   : > { %v2440_v62 = vpop.f32.mrf.mxu2 }
 0x1ec   : > { %v2442_v52 = vpop.permute.xlu0 %1100 }
 0x1ed   : > { %v1105_v59 = vpop.permute.xlu2 %1104 }
 0x1ee   : > { %v1307_v9 = vadd.f32 %v1306_v34, %v1105_v59  ;;  %1397 = vrot.lane.b32.xlu0 %v1330_v1, %s1720_s19  ;;  %v1315_v32 = vpop.f32.mrf.mxu3 }
 0x1f0   : > { %v1352_v38 = vmax.f32 %v1307_v9, 0.0 }
 0x1f1   : > { %v979_v12 = vpop.permute.xlu1 %978  ;;  %1401 = vrot.lane.b32.xlu2 %v1332_v63, %s1720_s19 }
 0x1f2   : > { %1046 = vst.msk [vmem:[%s1851_s17 + $0xe8] sm:$0xff] %vm1016_vm1, %v979_v12  ;;  %1441 = vrot.lane.b32.xlu1 %v1352_v38, %s1720_s19 }
 0x1f3   : > { %v1264_v48 = vpop.f32.mrf.mxu2 }
 0x1f4   : > { %v935_v13 = vpop.permute.xlu0 %934  ;;  %v1265_v11 = vadd.f32 %v1264_v48, %v2306_v20  ;;  %v1250_v20 = vadd.f32 %v2404_v22, %v2279_v10  ;;  %v1259_v10 = vadd.f32 %v1258_v56, %v2293_v14  ;;  %v1253_v56 = vadd.f32 %v2417_v45, %v2212_v37 }
 0x1f5   : > { %1024 = vst.msk [vmem:[%s1851_s17 + $0x38] sm:$0xff] %vm1016_vm1, %v935_v13  ;;  %v1111_v15 = vpop.permute.xlu2 %1110 }
 0x1f6   : > { %1445 = vrot.lane.b32.xlu0 %v1354_v42, %s1720_s19  ;;  %v1338_v33 = vmax.f32 %v1265_v11, 0.0  ;;  %v1333_v34 = vmax.f32 %v1250_v20, 0.0  ;;  %v1316_v19 = vadd.f32 %v1315_v32, %v1111_v15  ;;  %v1336_v44 = vmax.f32 %v1259_v10, 0.0  ;;  %v1318_v11 = vpop.f32.mrf.mxu3 }
 0x1f7   : > { %v1334_v1 = vmax.f32 %v1253_v56, 0.0 }
 0x1f8   : > { %v1355_v22 = vmax.f32 %v1316_v19, 0.0 }
 0x1f9   : > { %v937_v7 = vpop.permute.xlu1 %936  ;;  %1407 = vrot.lane.b32.xlu2 %v1335_v18, %s1720_s19 }
 0x1fa   : > { %1025 = vst.msk [vmem:[%s1851_s17 + $0x40] sm:$0xff] %vm1016_vm1, %v937_v7  ;;  %960 = vrot.lane.b32.xlu1 %v876_v4, %s1721_s28 }
 0x1fb   : > { %v1267_v21 = vpop.f32.mrf.mxu2 }
 0x1fc   : > { %v983_v6 = vpop.permute.xlu0 %982  ;;  %v1268_v14 = vadd.f32 %v1267_v21, %v2318_v24 }
 0x1fd   : > { %1048 = vst.msk [vmem:[%s1851_s17 + $0xf8] sm:$0xff] %vm1016_vm1, %v983_v6  ;;  %v2464_v31 = vpop.permute.xlu2 %1116 }
 0x1fe   : > { %964 = vrot.lane.b32.xlu0 %v878_v61, %s1721_s28  ;;  %v1339_v23 = vmax.f32 %v1268_v14, 0.0 }
 0x201   : > { %v943_v4 = vpop.permute.xlu1 %942  ;;  %1413 = vrot.lane.b32.xlu2 %v1338_v33, %s1720_s19 }
 0x202   : > { %1028 = vst.msk [vmem:[%s1851_s17 + $0x58] sm:$0xff] %vm1016_vm1, %v943_v4  ;;  %1399 = vrot.lane.b32.xlu1 %v1331_v3, %s1720_s19 }
 0x203   : > { %v1270_v40 = vpop.f32.mrf.mxu2 }
 0x204   : > { %v941_v17 = vpop.permute.xlu0 %940  ;;  %v1271_v53 = vadd.f32 %v1270_v40, %v2410_v30 }
 0x205   : > { %1027 = vst.msk [vmem:[%s1851_s17 + $0x50] sm:$0xff] %vm1016_vm1, %v941_v17  ;;  %v981_v61 = vpop.permute.xlu2 %980 }
 0x206   : > { %1047 = vst.msk [vmem:[%s1851_s17 + $0xf0] sm:$0xff] %vm1016_vm1, %v981_v61  ;;  %1403 = vrot.lane.b32.xlu0 %v1333_v34, %s1720_s19 }
 0x209   : > { %v949_v36 = vpop.permute.xlu1 %948 }
 0x20a   : > { %1031 = vst.msk [vmem:[%s1851_s17 + $0x70] sm:$0xff] %vm1016_vm1, %v949_v36  ;;  %1447 = vrot.lane.b32.xlu1 %v1355_v22, %s1720_s19 }
 0x20b   : > { %v1273_v43 = vpop.f32.mrf.mxu2 }
 0x20c   : > { %v1274_v2 = vadd.f32 %v1273_v43, %v2393_v8  ;;  %v947_v5 = vpop.permute.xlu0 %946 }
 0x20d   : > { %1030 = vst.msk [vmem:[%s1851_s17 + $0x68] sm:$0xff] %vm1016_vm1, %v947_v5  ;;  %v939_v46 = vpop.permute.xlu2 %938 }
 0x20e   : > { %v1341_v50 = vmax.f32 %v1274_v2, 0.0  ;;  %1026 = vst.msk [vmem:[%s1851_s17 + $0x48] sm:$0xff] %vm1016_vm1, %v939_v46  ;;  %1409 = vrot.lane.b32.xlu0 %v1336_v44, %s1720_s19 }
 0x210   : > { %1419 = vrot.lane.b32.xlu2 %v1341_v50, %s1720_s19 }
 0x211   : > { %v955_v54 = vpop.permute.xlu1 %954 }
 0x212   : > { %1034 = vst.msk [vmem:[%s1851_s17 + $0x88] sm:$0xff] %vm1016_vm1, %v955_v54  ;;  %966 = vrot.lane.b32.xlu1 %v879_v27, %s1721_s28  ;;  %v1262_v27 = vadd.f32 %v2440_v62, %v2250_v57  ;;  %v1340_v62 = vmax.f32 %v1271_v53, 0.0 }
 0x213   : > { %v1276_v8 = vpop.f32.mrf.mxu2 }
 0x214   : > { %v953_v60 = vpop.permute.xlu0 %952  ;;  %v1277_v59 = vadd.f32 %v1276_v8, %v2386_v16  ;;  %v1337_v16 = vmax.f32 %v1262_v27, 0.0 }
 0x215   : > { %1033 = vst.msk [vmem:[%s1851_s17 + $0x80] sm:$0xff] %vm1016_vm1, %v953_v60  ;;  %v945_v24 = vpop.permute.xlu2 %944 }
 0x216   : > { %1029 = vst.msk [vmem:[%s1851_s17 + $0x60] sm:$0xff] %vm1016_vm1, %v945_v24  ;;  %1415 = vrot.lane.b32.xlu0 %v1339_v23, %s1720_s19  ;;  %v1342_v45 = vmax.f32 %v1277_v59, 0.0 }
 0x21a   : > { %1405 = vrot.lane.b32.xlu1 %v1334_v1, %s1720_s19  ;;  %v1394_v29 = vpop.permute.xlu1 %1393 }
 0x21b   : > { %1489 = vst.msk [vmem:[%s1851_s17 + $0x8] sm:$0xff] %vm1487_vm2, %v1394_v29  ;;  %v1279_v37 = vpop.f32.mrf.mxu2 }
 0x21c   : > { %v1392_v9 = vpop.permute.xlu0 %1391  ;;  %v1280_v48 = vadd.f32 %v1279_v37, %v2422_v51 }
 0x21d   : > { %v951_v63 = vpop.permute.xlu2 %950  ;;  %1488 = vst.msk [vmem:[%s1851_s17] sm:$0xff] %vm1487_vm2, %v1392_v9 }
 0x21e   : > { %1032 = vst.msk [vmem:[%s1851_s17 + $0x78] sm:$0xff] %vm1016_vm1, %v951_v63  ;;  %1421 = vrot.lane.b32.xlu0 %v1342_v45, %s1720_s19 }
 0x222   : > { %1411 = vrot.lane.b32.xlu1 %v1337_v16, %s1720_s19 }
 0x223   : > { %v1282_v47 = vpop.f32.mrf.mxu2 }
 0x224   : > { %v1283_v38 = vadd.f32 %v1282_v47, %v2406_v28  ;;  %v1343_v28 = vmax.f32 %v1280_v48, 0.0 }
 0x225   : > { %v957_v12 = vpop.permute.xlu2 %956 }
 0x226   : > { %v1344_v57 = vmax.f32 %v1283_v38, 0.0  ;;  %1035 = vst.msk [vmem:[%s1851_s17 + $0x90] sm:$0xff] %vm1016_vm1, %v957_v12 }
 0x228   : > { %1425 = vrot.lane.b32.xlu2 %v1344_v57, %s1720_s19 }
 0x22a   : > { %1417 = vrot.lane.b32.xlu1 %v1340_v62, %s1720_s19 }
 0x22b   : > { %v1285_v0 = vpop.f32.mrf.mxu2 }
 0x22c   : > { %v1286_v42 = vadd.f32 %v1285_v0, %v2399_v26 }
 0x22d   : > { %v1396_v13 = vpop.permute.xlu2 %1395 }
 0x22e   : > { %v1345_v15 = vmax.f32 %v1286_v42, 0.0  ;;  %1490 = vst.msk [vmem:[%s1851_s17 + $0x10] sm:$0xff] %vm1487_vm2, %v1396_v13 }
 0x230   : > { %1427 = vrot.lane.b32.xlu0 %v1345_v15, %s1720_s19 }
 0x232   : > { %1423 = vrot.lane.b32.xlu1 %v1343_v28, %s1720_s19 }
 0x233   : > { %v1288_v30 = vpop.f32.mrf.mxu2 }
 0x234   : > { %v1289_v18 = vadd.f32 %v1288_v30, %v2424_v49  ;;  %v1321_v49 = vpop.f32.mrf.mxu3 }
 0x235   : > { %v1322_v4 = vadd.f32 %v1321_v49, %v2436_v35 }
 0x236   : > { %v1346_v7 = vmax.f32 %v1289_v18, 0.0 }
 0x237   : > { %v1357_v34 = vmax.f32 %v1322_v4, 0.0 }
 0x23a   : > { %1429 = vrot.lane.b32.xlu1 %v1346_v7, %s1720_s19 }
 0x23b   : > { %v1291_v51 = vpop.f32.mrf.mxu2  ;;  %v1444_v21 = vpop.permute.xlu2 %1443 }
 0x23c   : > { %v1292_v26 = vadd.f32 %v1291_v51, %v2420_v39  ;;  %1514 = vst.msk [vmem:[%s1851_s17 + $0xd0] sm:$0xff] %vm1487_vm2, %v1444_v21 }
 0x23e   : > { %v1347_v25 = vmax.f32 %v1292_v26, 0.0 }
 0x240   : > { %1431 = vrot.lane.b32.xlu2 %v1347_v25, %s1720_s19 }
 0x243   : > { %v1294_v6 = vpop.f32.mrf.mxu2  ;;  %v963_v33 = vpop.permute.xlu2 %962 }
 0x244   : > { %v1295_v3 = vadd.f32 %v1294_v6, %v2415_v55  ;;  %1038 = vst.msk [vmem:[%s1851_s17 + $0xa8] sm:$0xff] %vm1016_vm1, %v963_v33  ;;  %v1324_v55 = vpop.f32.mrf.mxu3 }
 0x245   : > { %v1325_v35 = vadd.f32 %v1324_v55, %v2464_v31  ;;  %v1319_v31 = vadd.f32 %v1318_v11, %v2428_v41 }
 0x246   : > { %v1348_v20 = vmax.f32 %v1295_v3, 0.0 }
 0x247   : > { %v1358_v22 = vmax.f32 %v1325_v35, 0.0 }
 0x248   : > { %1433 = vrot.lane.b32.xlu0 %v1348_v20, %s1720_s19 }
 0x24b   : > { %v1297_v39 = vpop.f32.mrf.mxu2  ;;  %v1402_v32 = vpop.permute.xlu2 %1401 }
 0x24c   : > { %v1298_v40 = vadd.f32 %v1297_v39, %v2430_v58  ;;  %1493 = vst.msk [vmem:[%s1851_s17 + $0x28] sm:$0xff] %vm1487_vm2, %v1402_v32 }
 0x24e   : > { %v1349_v19 = vmax.f32 %v1298_v40, 0.0 }
 0x250   : > { %1435 = vrot.lane.b32.xlu1 %v1349_v19, %s1720_s19  ;;  %1451 = vrot.lane.b32.xlu0 %v1357_v34, %s1720_s19  ;;  %v1440_v17 = vpop.permute.xlu0 %1439 }
 0x251   : > { %1512 = vst.msk [vmem:[%s1851_s17 + $0xc0] sm:$0xff] %vm1487_vm2, %v1440_v17 }
 0x253   : > { %v1300_v61 = vpop.f32.mrf.mxu2  ;;  %v1408_v10 = vpop.permute.xlu2 %1407 }
 0x254   : > { %v1301_v58 = vadd.f32 %v1300_v61, %v2442_v52  ;;  %1496 = vst.msk [vmem:[%s1851_s17 + $0x40] sm:$0xff] %vm1487_vm2, %v1408_v10  ;;  %v1356_v52 = vmax.f32 %v1319_v31, 0.0 }
 0x256   : > { %v1350_v36 = vmax.f32 %v1301_v58, 0.0 }
 0x258   : > { %1437 = vrot.lane.b32.xlu2 %v1350_v36, %s1720_s19  ;;  %1453 = vrot.lane.b32.xlu1 %v1358_v22, %s1720_s19  ;;  %v959_v43 = vpop.permute.xlu0 %958 }
 0x259   : > { %1036 = vst.msk [vmem:[%s1851_s17 + $0x98] sm:$0xff] %vm1016_vm1, %v959_v43 }
 0x25b   : > { %v1414_v44 = vpop.permute.xlu2 %1413 }
 0x25c   : > { %1499 = vst.msk [vmem:[%s1851_s17 + $0x58] sm:$0xff] %vm1487_vm2, %v1414_v44 }
 0x260   : > { %1449 = vrot.lane.b32.xlu2 %v1356_v52, %s1720_s19  ;;  %v1398_v2 = vpop.permute.xlu0 %1397 }
 0x261   : > { %1491 = vst.msk [vmem:[%s1851_s17 + $0x18] sm:$0xff] %vm1487_vm2, %v1398_v2 }
 0x264   : > { %v1442_v5 = vpop.permute.xlu1 %1441 }
 0x265   : > { %1513 = vst.msk [vmem:[%s1851_s17 + $0xc8] sm:$0xff] %vm1487_vm2, %v1442_v5 }
 0x268   : > { %v1446_v46 = vpop.permute.xlu0 %1445 }
 0x269   : > { %1515 = vst.msk [vmem:[%s1851_s17 + $0xd8] sm:$0xff] %vm1487_vm2, %v1446_v46 }
 0x26a   : > { %v1420_v41 = vpop.permute.xlu2 %1419 }
 0x26b   : > { %1502 = vst.msk [vmem:[%s1851_s17 + $0x70] sm:$0xff] %vm1487_vm2, %v1420_v41 }
 0x26c   : > { %v961_v50 = vpop.permute.xlu1 %960 }
 0x26d   : > { %1037 = vst.msk [vmem:[%s1851_s17 + $0xa0] sm:$0xff] %vm1016_vm1, %v961_v50 }
 0x270   : > { %v965_v14 = vpop.permute.xlu0 %964 }
 0x271   : > { %1039 = vst.msk [vmem:[%s1851_s17 + $0xb0] sm:$0xff] %vm1016_vm1, %v965_v14 }
 0x274   : > { %v1400_v54 = vpop.permute.xlu1 %1399 }
 0x275   : > { %1492 = vst.msk [vmem:[%s1851_s17 + $0x20] sm:$0xff] %vm1487_vm2, %v1400_v54 }
 0x278   : > { %v1404_v8 = vpop.permute.xlu0 %1403 }
 0x279   : > { %1494 = vst.msk [vmem:[%s1851_s17 + $0x30] sm:$0xff] %vm1487_vm2, %v1404_v8 }
 0x27c   : > { %v1448_v56 = vpop.permute.xlu1 %1447 }
 0x27d   : > { %1516 = vst.msk [vmem:[%s1851_s17 + $0xe0] sm:$0xff] %vm1487_vm2, %v1448_v56 }
 0x280   : > { %v1410_v23 = vpop.permute.xlu0 %1409 }
 0x281   : > { %1497 = vst.msk [vmem:[%s1851_s17 + $0x48] sm:$0xff] %vm1487_vm2, %v1410_v23 }
 0x282   : > { %v1426_v60 = vpop.permute.xlu2 %1425 }
 0x283   : > { %1505 = vst.msk [vmem:[%s1851_s17 + $0x88] sm:$0xff] %vm1487_vm2, %v1426_v60 }
 0x284   : > { %v967_v24 = vpop.permute.xlu1 %966 }
 0x285   : > { %1040 = vst.msk [vmem:[%s1851_s17 + $0xb8] sm:$0xff] %vm1016_vm1, %v967_v24 }
 0x288   : > { %v1416_v1 = vpop.permute.xlu0 %1415 }
 0x289   : > { %1500 = vst.msk [vmem:[%s1851_s17 + $0x60] sm:$0xff] %vm1487_vm2, %v1416_v1 }
 0x28c   : > { %v1406_v59 = vpop.permute.xlu1 %1405 }
 0x28d   : > { %1495 = vst.msk [vmem:[%s1851_s17 + $0x38] sm:$0xff] %vm1487_vm2, %v1406_v59 }
 0x290   : > { %v1422_v29 = vpop.permute.xlu0 %1421 }
 0x291   : > { %1503 = vst.msk [vmem:[%s1851_s17 + $0x78] sm:$0xff] %vm1487_vm2, %v1422_v29 }
 0x294   : > { %v1412_v37 = vpop.permute.xlu1 %1411 }
 0x295   : > { %1498 = vst.msk [vmem:[%s1851_s17 + $0x50] sm:$0xff] %vm1487_vm2, %v1412_v37 }
 0x29a   : > { %v1432_v27 = vpop.permute.xlu2 %1431 }
 0x29b   : > { %1508 = vst.msk [vmem:[%s1851_s17 + $0xa0] sm:$0xff] %vm1487_vm2, %v1432_v27 }
 0x29c   : > { %v1418_v45 = vpop.permute.xlu1 %1417 }
 0x29d   : > { %1501 = vst.msk [vmem:[%s1851_s17 + $0x68] sm:$0xff] %vm1487_vm2, %v1418_v45 }
 0x2a2   : > { %v1428_v9 = vpop.permute.xlu0 %1427 }
 0x2a3   : > { %1506 = vst.msk [vmem:[%s1851_s17 + $0x90] sm:$0xff] %vm1487_vm2, %v1428_v9 }
 0x2a4   : > { %v1424_v63 = vpop.permute.xlu1 %1423 }
 0x2a5   : > { %1504 = vst.msk [vmem:[%s1851_s17 + $0x80] sm:$0xff] %vm1487_vm2, %v1424_v63 }
 0x2ac   : > { %v1430_v16 = vpop.permute.xlu1 %1429 }
 0x2ad   : > { %1507 = vst.msk [vmem:[%s1851_s17 + $0x98] sm:$0xff] %vm1487_vm2, %v1430_v16 }
 0x2b2   : > { %v1438_v47 = vpop.permute.xlu2 %1437 }
 0x2b3   : > { %1511 = vst.msk [vmem:[%s1851_s17 + $0xb8] sm:$0xff] %vm1487_vm2, %v1438_v47 }
 0x2ba   : > { %v1450_v53 = vpop.permute.xlu2 %1449  ;;  %v1434_v38 = vpop.permute.xlu0 %1433 }
 0x2bb   : > { %1517 = vst.msk [vmem:[%s1851_s17 + $0xe8] sm:$0xff] %vm1487_vm2, %v1450_v53 }
 0x2bc   : > { %1509 = vst.msk [vmem:[%s1851_s17 + $0xa8] sm:$0xff] %vm1487_vm2, %v1434_v38 }
 0x2c2   : > { %v1436_v12 = vpop.permute.xlu1 %1435  ;;  %v1452_v57 = vpop.permute.xlu0 %1451 }
 0x2c3   : > { %1510 = vst.msk [vmem:[%s1851_s17 + $0xb0] sm:$0xff] %vm1487_vm2, %v1436_v12 }
 0x2c4   : > { %1518 = vst.msk [vmem:[%s1851_s17 + $0xf0] sm:$0xff] %vm1487_vm2, %v1452_v57 }
 0x2ca   : > { %v1454_v62 = vpop.permute.xlu1 %1453 }
 0x2cb   : > { %1519 = vst.msk [vmem:[%s1851_s17 + $0xf8] sm:$0xff] %vm1487_vm2, %v1454_v62 }
 0x2cc PF: > { %s14_s15 = sadd.s32 1, %s1717_s15  }
 0x2cd   : > { %p11_p4 = scmp.ge.s32.totalorder %s14_s15, 4  }
 0x2cf   :  { %13 = sbr.rel (!%p11_p4) target bundleno = 1 (0x1), region = 67 }

</bundles_post_ra>
